<compile_context>
chip_gen: v7x
topology: tpu7x:2x2x1
jax: 0.10.0
libtpu: 0.0.40
codegen_flags: <defaults>
</compile_context>

<pallas_src>
import jax
import jax.numpy as jnp
from jax import lax
from jax.experimental import pallas as pl
from jax.experimental.pallas import tpu as pltpu


def _round_up(x, m):
    return (x + m - 1) // m * m


def _make_adapter_kernel(sub_rows, n_sub):
    """relu(relu(x @ W1) @ W2) on one (tm, c_in) row tile, in row sub-chunks."""

    def kernel(x_ref, w1_ref, w2_ref, o_ref):
        # Resident weights (constant index_map, single-buffered).
        w1 = w1_ref[...]
        w2 = w2_ref[...]

        def compute(x):
            h = jnp.dot(x, w1, preferred_element_type=jnp.float32)
            h = jnp.maximum(h, 0.0)                      # ReLU 1
            y = jnp.dot(h.astype(w2.dtype), w2, preferred_element_type=jnp.float32)
            return jnp.maximum(y, 0.0)                   # ReLU 2

        if n_sub == 1:
            o_ref[...] = compute(x_ref[...]).astype(o_ref.dtype)
        else:
            # Sub-chunk rows so the f32 intermediate h keeps a short, register-resident
            # live range even when the DMA tile is large (avoids VMEM spill traffic).
            def body(s, carry):
                r = pl.multiple_of(s * sub_rows, sub_rows)
                y = compute(x_ref[pl.ds(r, sub_rows), :])
                o_ref[pl.ds(r, sub_rows), :] = y.astype(o_ref.dtype)
                return carry

            lax.fori_loop(0, n_sub, body, 0, unroll=True)

    return kernel


def adapter_cc(x, w1, w2, *, tm=512, compute_dtype=jnp.bfloat16, out_dtype=None):
    """x: (B, c_in); w1: (c_in, hidden); w2: (hidden, c_in). Returns (B, c_in) in out_dtype.

    For the zero-extra-HBM-pass path, pass x / w1 / w2 already in `compute_dtype`.
    """
    B, c_in = x.shape
    hidden = w1.shape[1]
    assert w1.shape == (c_in, hidden) and w2.shape == (hidden, c_in)

    # Cast only if needed (bf16 storage halves HBM bytes; MXU accumulates in f32 either way).
    if x.dtype != compute_dtype:
        x = x.astype(compute_dtype)
    if w1.dtype != compute_dtype:
        w1 = w1.astype(compute_dtype)
    if w2.dtype != compute_dtype:
        w2 = w2.astype(compute_dtype)
    # Default output to the compute dtype -> bf16 writeback cuts kernel HBM traffic ~33%.
    out_dtype = compute_dtype if out_dtype is None else out_dtype

    # Pad only the tiny hidden dim of the weights to a multiple of 128 (exact: zero columns of W1
    # stay zero through ReLU and hit zero rows of W2). No-op when hidden % 128 == 0 (CLIP).
    h_pad = _round_up(hidden, 128)
    if h_pad != hidden:
        w1 = jnp.pad(w1, ((0, 0), (0, h_pad - hidden)))
        w2 = jnp.pad(w2, ((0, h_pad - hidden), (0, 0)))

    # Row tile: multiple of 16 (bf16 sublane packing; also covers f32's 8). No padding of B:
    # the last grid step may be ragged and Pallas drops the out-of-bounds output rows.
    ROW_ALIGN = 16
    tm = min(tm, _round_up(B, ROW_ALIGN))
    if B > ROW_ALIGN:
        # Keep >= 2 grid steps so the x/out DMAs pipeline and the row axis can shard across
        # v7x's 2 TensorCores.
        tm = min(tm, _round_up(pl.cdiv(B, 2), ROW_ALIGN))
    tm = max(ROW_ALIGN, _round_up(tm, ROW_ALIGN))
    grid = (pl.cdiv(B, tm),)

    # In-kernel row sub-chunk size.
    SUB_ROWS = 128
    if tm <= SUB_ROWS or tm % SUB_ROWS != 0:
        sub_rows, n_sub = tm, 1
    else:
        sub_rows, n_sub = SUB_ROWS, tm // SUB_ROWS

    xbytes = jnp.dtype(compute_dtype).itemsize
    obytes = jnp.dtype(out_dtype).itemsize
    cost = pl.CostEstimate(
        flops=4 * B * c_in * h_pad,                     # two matmuls
        transcendentals=0,
        bytes_accessed=B * c_in * (xbytes + obytes) + 2 * c_in * h_pad * xbytes,
    )

    return pl.pallas_call(
        _make_adapter_kernel(sub_rows, n_sub),
        out_shape=jax.ShapeDtypeStruct((B, c_in), out_dtype),
        grid_spec=pltpu.PrefetchScalarGridSpec(
            num_scalar_prefetch=0,
            grid=grid,
            in_specs=[
                # Activation tile: double-buffered (default) so DMA of tile i+1 hides under compute.
                pl.BlockSpec((tm, c_in), lambda i: (i, 0)),
                # Resident weights: constant block index, single-buffered to save VMEM.
                pl.BlockSpec((c_in, h_pad), lambda i: (0, 0),
                             pipeline_mode=pl.Buffered(1)),
                pl.BlockSpec((h_pad, c_in), lambda i: (0, 0),
                             pipeline_mode=pl.Buffered(1)),
            ],
            out_specs=pl.BlockSpec((tm, c_in), lambda i: (i, 0)),
        ),
        compiler_params=pltpu.CompilerParams(
            dimension_semantics=("parallel",)),          # row axis shards across v7x's 2 TCs
        cost_estimate=cost,
    )(x, w1, w2)


if __name__ == "__main__":
    # Small, deterministic setup consistent with the module: c_in=64, reduction=4.
    # B=512 so the clamped row tile (256) gives a 2-step pipelined / 2-TC-shardable grid.
    B, c_in, reduction = 512, 64, 4
    hidden = c_in // reduction

    key = jax.random.PRNGKey(0)
    kx, k1, k2 = jax.random.split(key, 3)

    x = jax.random.normal(kx, (B, c_in), dtype=jnp.float32)
    # PyTorch nn.Linear stores weight as (out, in); we store the transpose (in, out).
    w1 = jax.random.normal(k1, (c_in, hidden), dtype=jnp.float32) * 0.1
    w2 = jax.random.normal(k2, (hidden, c_in), dtype=jnp.float32) * 0.1

    # Pure-JAX reference.
    ref = jnp.maximum(jnp.maximum(x @ w1, 0.0) @ w2, 0.0)

    # Strict correctness check with f32 storage + compute.
    out_f32 = jax.block_until_ready(adapter_cc(x, w1, w2, compute_dtype=jnp.float32))
    assert out_f32.shape == (B, c_in) and out_f32.dtype == jnp.float32
    assert jnp.allclose(out_f32, ref, atol=1e-5, rtol=1e-5), "f32 path mismatch vs reference"

    # Fast path: bf16 storage in/out, f32 MXU accumulation. Inputs are pre-cast so the wrapper
    # performs zero extra HBM passes (no pad / cast / slice over x or the output).
    xb, w1b, w2b = (a.astype(jnp.bfloat16) for a in (x, w1, w2))
    out_bf16 = jax.block_until_ready(adapter_cc(xb, w1b, w2b))
    assert out_bf16.shape == (B, c_in) and out_bf16.dtype == jnp.bfloat16
    assert jnp.allclose(out_bf16.astype(jnp.float32), ref, atol=5e-2, rtol=5e-2), \
        "bf16 path mismatch vs reference"

    print("KERNEL_OK")
</pallas_src>

<mosaic_0001>
module attributes {stable_mosaic.version = 11 : i64} {
  func.func @kernel(%arg0: i32, %arg1: memref<256x64xf32, #tpu.memory_space<vmem>>, %arg2: memref<64x128xf32, #tpu.memory_space<vmem>>, %arg3: memref<128x64xf32, #tpu.memory_space<vmem>>, %arg4: memref<256x64xf32, #tpu.memory_space<vmem>>) attributes {dimension_semantics = [#tpu.dimension_semantics<parallel>], iteration_bounds = array<i64: 2>, scalar_prefetch = 0 : i64, scratch_operands = 0 : i64, tpu.core_type = #tpu.core_type<tc>, window_params = [{transform_indices = @transform_0, window_bounds = array<i64: 256, 64>}, {pipeline_mode = #tpu.pipeline_mode<synchronous>, transform_indices = @transform_1, window_bounds = array<i64: 64, 128>}, {pipeline_mode = #tpu.pipeline_mode<synchronous>, transform_indices = @transform_2, window_bounds = array<i64: 128, 64>}, {transform_indices = @transform_3, window_bounds = array<i64: 256, 64>}]} {
    %c0 = arith.constant 0 : index
    %c0_0 = arith.constant 0 : index
    %0 = vector.load %arg2[%c0, %c0_0] : memref<64x128xf32, #tpu.memory_space<vmem>>, vector<64x128xf32>
    %c0_1 = arith.constant 0 : index
    %c0_2 = arith.constant 0 : index
    %1 = vector.load %arg3[%c0_1, %c0_2] : memref<128x64xf32, #tpu.memory_space<vmem>>, vector<128x64xf32>
    %c0_i32 = arith.constant 0 : i32
    %c128_i32 = arith.constant 128 : i32
    %2 = arith.muli %c0_i32, %c128_i32 : i32
    %3 = tpu.assume_multiple %2, 128 : i32
    %4 = arith.index_cast %3 : i32 to index
    %c0_3 = arith.constant 0 : index
    %5 = vector.load %arg1[%4, %c0_3] : memref<256x64xf32, #tpu.memory_space<vmem>>, vector<128x64xf32>
    %cst = arith.constant dense<0.000000e+00> : vector<128x128xf32>
    %6 = tpu.matmul %5, %0, %cst {dimension_numbers = #tpu.dot_dimension_numbers<[1], [0], [0], [1], [0, 0, 1, 1], [], []>} : vector<128x64xf32>, vector<64x128xf32>, vector<128x128xf32> -> vector<128x128xf32>
    %cst_4 = arith.constant 0.000000e+00 : f32
    %7 = vector.broadcast %cst_4 : f32 to vector<128x128xf32>
    %8 = arith.maximumf %6, %7 : vector<128x128xf32>
    %cst_5 = arith.constant dense<0.000000e+00> : vector<128x64xf32>
    %9 = tpu.matmul %8, %1, %cst_5 {dimension_numbers = #tpu.dot_dimension_numbers<[1], [0], [0], [1], [0, 0, 1, 1], [], []>} : vector<128x128xf32>, vector<128x64xf32>, vector<128x64xf32> -> vector<128x64xf32>
    %cst_6 = arith.constant 0.000000e+00 : f32
    %10 = vector.broadcast %cst_6 : f32 to vector<128x64xf32>
    %11 = arith.maximumf %9, %10 : vector<128x64xf32>
    %12 = arith.index_cast %3 : i32 to index
    %c0_7 = arith.constant 0 : index
    %13 = vector.load %arg4[%12, %c0_7] : memref<256x64xf32, #tpu.memory_space<vmem>>, vector<128x64xf32>
    tpu.vector_store %arg4[%12, %c0_7], %11 {strides = array<i32>} : memref<256x64xf32, #tpu.memory_space<vmem>>, vector<128x64xf32>,
    %c1_i32 = arith.constant 1 : i32
    %c128_i32_8 = arith.constant 128 : i32
    %14 = arith.muli %c1_i32, %c128_i32_8 : i32
    %15 = tpu.assume_multiple %14, 128 : i32
    %16 = arith.index_cast %15 : i32 to index
    %c0_9 = arith.constant 0 : index
    %17 = vector.load %arg1[%16, %c0_9] : memref<256x64xf32, #tpu.memory_space<vmem>>, vector<128x64xf32>
    %cst_10 = arith.constant dense<0.000000e+00> : vector<128x128xf32>
    %18 = tpu.matmul %17, %0, %cst_10 {dimension_numbers = #tpu.dot_dimension_numbers<[1], [0], [0], [1], [0, 0, 1, 1], [], []>} : vector<128x64xf32>, vector<64x128xf32>, vector<128x128xf32> -> vector<128x128xf32>
    %cst_11 = arith.constant 0.000000e+00 : f32
    %19 = vector.broadcast %cst_11 : f32 to vector<128x128xf32>
    %20 = arith.maximumf %18, %19 : vector<128x128xf32>
    %cst_12 = arith.constant dense<0.000000e+00> : vector<128x64xf32>
    %21 = tpu.matmul %20, %1, %cst_12 {dimension_numbers = #tpu.dot_dimension_numbers<[1], [0], [0], [1], [0, 0, 1, 1], [], []>} : vector<128x128xf32>, vector<128x64xf32>, vector<128x64xf32> -> vector<128x64xf32>
    %cst_13 = arith.constant 0.000000e+00 : f32
    %22 = vector.broadcast %cst_13 : f32 to vector<128x64xf32>
    %23 = arith.maximumf %21, %22 : vector<128x64xf32>
    %24 = arith.index_cast %15 : i32 to index
    %c0_14 = arith.constant 0 : index
    %25 = vector.load %arg4[%24, %c0_14] : memref<256x64xf32, #tpu.memory_space<vmem>>, vector<128x64xf32>
    tpu.vector_store %arg4[%24, %c0_14], %23 {strides = array<i32>} : memref<256x64xf32, #tpu.memory_space<vmem>>, vector<128x64xf32>,
    %c2_i32 = arith.constant 2 : i32
    return
  }
  func.func @transform_0(%arg0: i32) -> (i32, i32) {
    %c0_i32 = arith.constant 0 : i32
    %c0_i32_0 = arith.constant 0 : i32
    return %arg0, %c0_i32 : i32, i32
  }
  func.func @transform_1(%arg0: i32) -> (i32, i32) {
    %c0_i32 = arith.constant 0 : i32
    %c0_i32_0 = arith.constant 0 : i32
    %c0_i32_1 = arith.constant 0 : i32
    return %c0_i32, %c0_i32_0 : i32, i32
  }
  func.func @transform_2(%arg0: i32) -> (i32, i32) {
    %c0_i32 = arith.constant 0 : i32
    %c0_i32_0 = arith.constant 0 : i32
    %c0_i32_1 = arith.constant 0 : i32
    return %c0_i32, %c0_i32_0 : i32, i32
  }
  func.func @transform_3(%arg0: i32) -> (i32, i32) {
    %c0_i32 = arith.constant 0 : i32
    %c0_i32_0 = arith.constant 0 : i32
    return %arg0, %c0_i32 : i32, i32
  }
}

</mosaic_0001>

<bundles_post_ra>
// kernel: tpu_custom_call.1
= control target key start
LH: loop header
LB: loop body
LE: loop exit
PB: predicated region body
PF: predicated region fallthrough
CT: control target
= control target key end

     0   :  { %s1588_s12 = smov 0   ;;  %s1880_s0 = inlined_call_operand.vmem [shape: f32[512,64], index: 0, kind: input, shape index: {}]   ;;  %s1881_s1 = inlined_call_operand.vmem [shape: f32[64,128], index: 1, kind: input, shape index: {}]   ;;  %s1882_s2 = inlined_call_operand.vmem [shape: f32[128,64], index: 2, kind: input, shape index: {}]   ;;  %s1883_s3 = inlined_call_operand.vmem [shape: f32[512,64], index: 3, kind: output, shape index: {}]  }
   0x1 LB: > { %s1061_s13 = sadd.s32 4294967295, %s1566_s12   ;;  %p1065_p0 = scmp.ge.s32.totalorder %s1566_s12, 1  ;;  %s1566_s12 = sphi %s1588_s12, %s13_s12  }
   0x2   : > { %p138_p1 = scmp.lt.s32.totalorder %s1566_s12, 3 }
   0x4   : > { %p139_p2 = pnand %p1065_p0, %p138_p1 }
   0x5   : > { %v174_v0 = vld [vmem:[%s1881_s1] sm:$0xff] (!%p139_p2)  ;;  %v175_v1 = vld [vmem:[%s1881_s1 + $0x8] sm:$0xff] (!%p139_p2)  ;;  %v176_v2 = vld [vmem:[%s1881_s1 + $0x10] sm:$0xff] (!%p139_p2)  ;;  %s1066_s20 = sshll.u32 (!%p139_p2), %s1061_s13, 5  ;;  %vm214_vm0 = vcmask (!%p139_p2), 523264  }
   0x6   : > { %142 = sbr.rel (%p139_p2) target bundleno = 516 (0x204), region = 32  ;;  %v1440_v3 = vpack.c.bf16 (!%p139_p2), %v175_v1, %v174_v0  ;;  %v177_v4 = vld [vmem:[%s1881_s1 + $0x18] sm:$0xff] (!%p139_p2)  ;;  %p163_p3 = scmp.lt.s32.totalorder (!%p139_p2), %s1066_s20, 63  ;;  %v178_v6 = vld [vmem:[%s1881_s1 + $0x20] sm:$0xff] (!%p139_p2)  ;;  %v179_v7 = vld [vmem:[%s1881_s1 + $0x28] sm:$0xff] (!%p139_p2) }
   0x7   : > { %v1444_v5 = vpack.c.bf16 (!%p139_p2), %v177_v4, %v176_v2  ;;  %v182_v8 = vld [vmem:[%s1882_s2] sm:$0xff] (!%p139_p2)  ;;  %v183_v9 = vld [vmem:[%s1882_s2 + $0x8] sm:$0xff] (!%p139_p2)  ;;  %v184_v10 = vld [vmem:[%s1882_s2 + $0x10] sm:$0xff] (!%p139_p2)  ;;  %v1448_v13 = vpack.c.bf16 (!%p139_p2), %v179_v7, %v178_v6 }
   0x8   : > { %1441 = vmatprep.subr.bf16.mxu0 (!%p139_p2), %v1440_v3  ;;  %v185_v11 = vld [vmem:[%s1882_s2 + $0x18] sm:$0xff] (!%p139_p2)  ;;  %v1628_v12 = vpack.c.bf16 (!%p139_p2), %v183_v9, %v182_v8  ;;  %v186_v15 = vld [vmem:[%s1882_s2 + $0x20] sm:$0xff] (!%p139_p2)  ;;  %v187_v16 = vld [vmem:[%s1882_s2 + $0x28] sm:$0xff] (!%p139_p2) }
   0x9   : > { %1443 = vmatpush3.bf16.msra.mxu0 (!%p139_p2), %v1440_v3  ;;  %v1631_v14 = vpack.c.bf16 (!%p139_p2), %v185_v11, %v184_v10  ;;  %v180_v17 = vld [vmem:[%s1881_s1 + $0x30] sm:$0xff] (!%p139_p2)  ;;  %v181_v18 = vld [vmem:[%s1881_s1 + $0x38] sm:$0xff] (!%p139_p2)  ;;  %v1656_v20 = vpack.c.bf16 (!%p139_p2), %v187_v16, %v186_v15  ;;  %v190_v25 = vld [vmem:[%s1882_s2 + $0x40] sm:$0xff] (!%p139_p2) }
   0xa   : > { %1445 = vmatprep.subr.bf16.mxu0 (!%p139_p2), %v1444_v5  ;;  %1457 = vmatprep.subr.bf16.mxu1 (!%p139_p2), %v1628_v12  ;;  %v1452_v21 = vpack.c.bf16 (!%p139_p2), %v181_v18, %v180_v17  ;;  %v188_v22 = vld [vmem:[%s1882_s2 + $0x30] sm:$0xff] (!%p139_p2)  ;;  %v189_v23 = vld [vmem:[%s1882_s2 + $0x38] sm:$0xff] (!%p139_p2)  ;;  %v191_v26 = vld [vmem:[%s1882_s2 + $0x48] sm:$0xff] (!%p139_p2) }
   0xb   : > { %1459 = vmatpush3.bf16.msra.mxu1 (!%p139_p2), %v1628_v12  ;;  %v1667_v24 = vpack.c.bf16 (!%p139_p2), %v189_v23, %v188_v22  ;;  %v1679_v29 = vpack.c.bf16 (!%p139_p2), %v191_v26, %v190_v25  ;;  %v192_v30 = vld [vmem:[%s1882_s2 + $0x50] sm:$0xff] (!%p139_p2)  ;;  %v193_v31 = vld [vmem:[%s1882_s2 + $0x58] sm:$0xff] (!%p139_p2)  ;;  %v194_v35 = vld [vmem:[%s1882_s2 + $0x60] sm:$0xff] (!%p139_p2) }
   0xc   : > { %1461 = vmatprep.subr.bf16.mxu1 (!%p139_p2), %v1631_v14  ;;  %v1693_v34 = vpack.c.bf16 (!%p139_p2), %v193_v31, %v192_v30  ;;  %v195_v36 = vld [vmem:[%s1882_s2 + $0x68] sm:$0xff] (!%p139_p2)  ;;  %v196_v1 = vld [vmem:[%s1882_s2 + $0x70] sm:$0xff] (!%p139_p2)  ;;  %v197_v2 = vld [vmem:[%s1882_s2 + $0x78] sm:$0xff] (!%p139_p2) }
   0xd   : > { %s1885_s20 = smov (!%p163_p3, %s1066_s20), 63  ;;  %1447 = vmatpush3.bf16.msra.mxu0 %v1444_v5  ;;  %v1707_v39 = vpack.c.bf16 %v195_v36, %v194_v35 }
   0xe   : > { %s1067_s8 = sshll.u32 %s1885_s20, 3  ;;  %1449 = vmatprep.subr.bf16.mxu0 %v1448_v13 }
   0xf   : > { %s1650_s21 = scalar_lea.vmem %s1880_s0, %s1067_s8  ;;  %1463 = vmatpush3.bf16.msra.mxu1 %v1631_v14  ;;  %s1811_s19 = scalar_lea.vmem %s1883_s3, %s1067_s8 }
  0x10   : > { %v198_v19 = vld [vmem:[%s1650_s21] sm:$0xff]  ;;  %1465 = vmatprep.subr.bf16.mxu1 %v1656_v20  ;;  %v199_v27 = vld [vmem:[%s1650_s21 + $0x8] sm:$0xff]  ;;  %v200_v28 = vld [vmem:[%s1650_s21 + $0x10] sm:$0xff] }
  0x11   : > { %1264 = vmatprep.mubr.msk.f32.mxu0 %vm214_vm0, %v198_v19  ;;  %1451 = vmatpush3.bf16.msra.mxu0 %v1448_v13  ;;  %v201_v32 = vld [vmem:[%s1650_s21 + $0x18] sm:$0xff]  ;;  %v202_v33 = vld [vmem:[%s1650_s21 + $0x20] sm:$0xff]  ;;  %v203_v37 = vld [vmem:[%s1650_s21 + $0x28] sm:$0xff] }
  0x12   : > { %1453 = vmatprep.subr.bf16.mxu0 %v1452_v21  ;;  %v204_v38 = vld [vmem:[%s1650_s21 + $0x30] sm:$0xff]  ;;  %v205_v40 = vld [vmem:[%s1650_s21 + $0x38] sm:$0xff]  ;;  %v206_v41 = vld [vmem:[%s1650_s21 + $0x40] sm:$0xff] }
  0x13   : > { %1467 = vmatpush3.bf16.msra.mxu1 %v1656_v20  ;;  %v207_v42 = vld [vmem:[%s1650_s21 + $0x48] sm:$0xff]  ;;  %v208_v43 = vld [vmem:[%s1650_s21 + $0x50] sm:$0xff]  ;;  %v209_v44 = vld [vmem:[%s1650_s21 + $0x58] sm:$0xff] }
  0x14   : > { %1469 = vmatprep.subr.bf16.mxu1 %v1667_v24  ;;  %v210_v45 = vld [vmem:[%s1650_s21 + $0x60] sm:$0xff]  ;;  %v211_v46 = vld [vmem:[%s1650_s21 + $0x68] sm:$0xff]  ;;  %v212_v47 = vld [vmem:[%s1650_s21 + $0x70] sm:$0xff] }
  0x15   : > { %1455 = vmatpush3.bf16.msra.mxu0 %v1452_v21  ;;  %v213_v48 = vld [vmem:[%s1650_s21 + $0x78] sm:$0xff]  ;;  %v1086_v49 = vld [vmem:[%s1650_s21 + $0x80] sm:$0xff]  ;;  %v1087_v50 = vld [vmem:[%s1650_s21 + $0x88] sm:$0xff] }
  0x16   : > { %1489 = vmatprep.subr.bf16.mxu0 %v1440_v3  ;;  %v1088_v51 = vld [vmem:[%s1650_s21 + $0x90] sm:$0xff]  ;;  %v1089_v52 = vld [vmem:[%s1650_s21 + $0x98] sm:$0xff]  ;;  %v1090_v53 = vld [vmem:[%s1650_s21 + $0xa0] sm:$0xff] }
  0x17   : > { %1471 = vmatpush3.bf16.msra.mxu1 %v1667_v24  ;;  %v1091_v54 = vld [vmem:[%s1650_s21 + $0xa8] sm:$0xff]  ;;  %v1092_v55 = vld [vmem:[%s1650_s21 + $0xb0] sm:$0xff]  ;;  %v1093_v56 = vld [vmem:[%s1650_s21 + $0xb8] sm:$0xff] }
  0x18   : > { %1265 = vmatmul.mubr.msk.f32.vlgmr.msra.gmra.mrb[0].mxu0 %vm214_vm0, %v199_v27  ;;  %1473 = vmatprep.subr.bf16.mxu1 %v1679_v29  ;;  %v1094_v57 = vld [vmem:[%s1650_s21 + $0xc0] sm:$0xff]  ;;  %v1095_v58 = vld [vmem:[%s1650_s21 + $0xc8] sm:$0xff]  ;;  %v1096_v59 = vld [vmem:[%s1650_s21 + $0xd0] sm:$0xff] }
  0x19   : > { %1491 = vmatpush3.bf16.msra.mxu0 %v1440_v3  ;;  %1267 = vmatprep.mubr.msk.f32.mxu0 %vm214_vm0, %v200_v28  ;;  %v1097_v60 = vld [vmem:[%s1650_s21 + $0xd8] sm:$0xff]  ;;  %v1098_v61 = vld [vmem:[%s1650_s21 + $0xe0] sm:$0xff]  ;;  %v1099_v62 = vld [vmem:[%s1650_s21 + $0xe8] sm:$0xff]  ;;  %v1784_v3 = vpack.c.bf16 %v197_v2, %v196_v1 }
  0x1a   : > { %1493 = vmatprep.subr.bf16.mxu0 %v1444_v5  ;;  %v1100_v63 = vld [vmem:[%s1650_s21 + $0xf0] sm:$0xff]  ;;  %v1101_v0 = vld [vmem:[%s1650_s21 + $0xf8] sm:$0xff] }
  0x1b   : > { %1475 = vmatpush3.bf16.msra.mxu1 %v1679_v29 }
  0x1c   : > { %1268 = vmatmul.mubr.msk.f32.gmra.mrb[2].mxu0 %vm214_vm0, %v201_v32  ;;  %1477 = vmatprep.subr.bf16.mxu1 %v1693_v34 }
  0x1d   : > { %1270 = vmatprep.mubr.msk.f32.mxu0 %vm214_vm0, %v202_v33  ;;  %1495 = vmatpush3.bf16.msra.mxu0 %v1444_v5 }
  0x1e   : > { %1497 = vmatprep.subr.bf16.mxu0 %v1448_v13 }
  0x1f   : > { %1479 = vmatpush3.bf16.msra.mxu1 %v1693_v34 }
  0x20   : > { %1271 = vmatmul.mubr.msk.f32.gmra.mrb[4].mxu0 %vm214_vm0, %v203_v37  ;;  %1481 = vmatprep.subr.bf16.mxu1 %v1707_v39 }
  0x21   : > { %1273 = vmatprep.mubr.msk.f32.mxu0 %vm214_vm0, %v204_v38  ;;  %1499 = vmatpush3.bf16.msra.mxu0 %v1448_v13 }
  0x22   : > { %1501 = vmatprep.subr.bf16.mxu0 %v1452_v21 }
  0x23   : > { %1483 = vmatpush3.bf16.msra.mxu1 %v1707_v39 }
  0x24   : > { %1274 = vmatmul.mubr.msk.f32.gmra.mrb[6].mxu0 %vm214_vm0, %v205_v40  ;;  %1485 = vmatprep.subr.bf16.mxu1 %v1784_v3 }
  0x25   : > { %1276 = vmatprep.mubr.msk.f32.mxu0 %vm214_vm0, %v206_v41  ;;  %1503 = vmatpush3.bf16.msra.mxu0 %v1452_v21 }
  0x26   : > { %1505 = vmatprep.subr.bf16.mxu0 %v1628_v12 }
  0x27   : > { %1487 = vmatpush3.bf16.msra.mxu1 %v1784_v3 }
  0x28   : > { %1277 = vmatmul.mubr.msk.f32.gmra.mrb[8].mxu0 %vm214_vm0, %v207_v42  ;;  %1536 = vmatprep.subr.bf16.mxu1 %v1628_v12 }
  0x29   : > { %1279 = vmatprep.mubr.msk.f32.mxu0 %vm214_vm0, %v208_v43 }
  0x2c   : > { %1280 = vmatmul.mubr.msk.f32.gmra.mrb[10].mxu0 %vm214_vm0, %v209_v44 }
  0x2d   : > { %1282 = vmatprep.mubr.msk.f32.mxu0 %vm214_vm0, %v210_v45 }
  0x30   : > { %1283 = vmatmul.mubr.msk.f32.gmra.mrb[12].mxu0 %vm214_vm0, %v211_v46 }
  0x31   : > { %1285 = vmatprep.mubr.msk.f32.mxu0 %vm214_vm0, %v212_v47 }
  0x34   : > { %1286 = vmatmul.mubr.msk.f32.gmra.mrb[14].mxu0 %vm214_vm0, %v213_v48 }
  0x35   : > { %1360 = vmatprep.mubr.msk.f32.mxu0 %vm214_vm0, %v1086_v49 }
  0x38   : > { %1361 = vmatmul.mubr.msk.f32.vlgmr.msra.gmra.mrb[16].mxu0 %vm214_vm0, %v1087_v50 }
  0x39   : > { %1363 = vmatprep.mubr.msk.f32.mxu0 %vm214_vm0, %v1088_v51  ;;  %1507 = vmatpush3.bf16.msra.mxu0 %v1628_v12 }
  0x3a   : > { %1509 = vmatprep.subr.bf16.mxu0 %v1631_v14 }
  0x3c   : > { %1364 = vmatmul.mubr.msk.f32.gmra.mrb[18].mxu0 %vm214_vm0, %v1089_v52 }
  0x3d   : > { %1366 = vmatprep.mubr.msk.f32.mxu0 %vm214_vm0, %v1090_v53  ;;  %1511 = vmatpush3.bf16.msra.mxu0 %v1631_v14 }
  0x3e   : > { %1513 = vmatprep.subr.bf16.mxu0 %v1656_v20 }
  0x40   : > { %1367 = vmatmul.mubr.msk.f32.gmra.mrb[20].mxu0 %vm214_vm0, %v1091_v54 }
  0x41   : > { %1369 = vmatprep.mubr.msk.f32.mxu0 %vm214_vm0, %v1092_v55  ;;  %1515 = vmatpush3.bf16.msra.mxu0 %v1656_v20 }
  0x42   : > { %1517 = vmatprep.subr.bf16.mxu0 %v1667_v24 }
  0x44   : > { %1370 = vmatmul.mubr.msk.f32.gmra.mrb[22].mxu0 %vm214_vm0, %v1093_v56 }
  0x45   : > { %1372 = vmatprep.mubr.msk.f32.mxu0 %vm214_vm0, %v1094_v57  ;;  %1519 = vmatpush3.bf16.msra.mxu0 %v1667_v24 }
  0x46   : > { %1521 = vmatprep.subr.bf16.mxu0 %v1679_v29 }
  0x48   : > { %1373 = vmatmul.mubr.msk.f32.gmra.mrb[24].mxu0 %vm214_vm0, %v1095_v58 }
  0x49   : > { %1375 = vmatprep.mubr.msk.f32.mxu0 %vm214_vm0, %v1096_v59  ;;  %1523 = vmatpush3.bf16.msra.mxu0 %v1679_v29 }
  0x4a   : > { %1525 = vmatprep.subr.bf16.mxu0 %v1693_v34 }
  0x4c   : > { %1376 = vmatmul.mubr.msk.f32.gmra.mrb[26].mxu0 %vm214_vm0, %v1097_v60 }
  0x4d   : > { %1378 = vmatprep.mubr.msk.f32.mxu0 %vm214_vm0, %v1098_v61  ;;  %1527 = vmatpush3.bf16.msra.mxu0 %v1693_v34 }
  0x4e   : > { %1529 = vmatprep.subr.bf16.mxu0 %v1707_v39 }
  0x50   : > { %1379 = vmatmul.mubr.msk.f32.gmra.mrb[28].mxu0 %vm214_vm0, %v1099_v62 }
  0x51   : > { %1381 = vmatprep.mubr.msk.f32.mxu0 %vm214_vm0, %v1100_v63  ;;  %1531 = vmatpush3.bf16.msra.mxu0 %v1707_v39 }
  0x52   : > { %1533 = vmatprep.subr.bf16.mxu0 %v1784_v3 }
  0x54   : > { %1382 = vmatmul.mubr.msk.f32.gmra.mrb[30].mxu0 %vm214_vm0, %v1101_v0 }
  0x55   : > { %1535 = vmatpush3.bf16.msra.mxu0 %v1784_v3 }
  0xeb   : > { %v1266_v4 = vpop.f32.mrb[0].mxu0 }
  0xec   : > { %v329_v5 = vpop.f32.mrb[1].mxu0  ;;  %v409_v7 = vmax.f32 %v1266_v4, 0.0 }
  0xed   : > { %v408_v6 = vmax.f32 %v329_v5, 0.0 }
  0xef   : > { %v1269_v8 = vpop.f32.mrb[2].mxu0  ;;  %1320 = vmatprep.mubr.f32.mxu1 %v408_v6 }
  0xf0   : > { %v339_v9 = vpop.f32.mrb[3].mxu0  ;;  %1321 = vmatmul.mubr.f32.vlgmr.msra.gmra.mrb[0].mxu1 %v409_v7  ;;  %v411_v11 = vmax.f32 %v1269_v8, 0.0 }
  0xf1   : > { %v410_v10 = vmax.f32 %v339_v9, 0.0  ;;  %1544 = vmatpush3.bf16.msra.mxu1 %v1628_v12 }
  0xf2   : > { %1537 = vmatprep.subr.bf16.mxu1 %v1631_v14 }
  0xf3   : > { %v1272_v13 = vpop.f32.mrb[4].mxu0  ;;  %1323 = vmatprep.mubr.f32.mxu1 %v410_v10 }
  0xf4   : > { %v349_v15 = vpop.f32.mrb[5].mxu0  ;;  %1324 = vmatmul.mubr.f32.gmra.mrb[2].mxu1 %v411_v11  ;;  %v413_v17 = vmax.f32 %v1272_v13, 0.0 }
  0xf5   : > { %v412_v16 = vmax.f32 %v349_v15, 0.0  ;;  %1545 = vmatpush3.bf16.msra.mxu1 %v1631_v14 }
  0xf6   : > { %1538 = vmatprep.subr.bf16.mxu1 %v1656_v20 }
  0xf7   : > { %v1275_v18 = vpop.f32.mrb[6].mxu0  ;;  %1326 = vmatprep.mubr.f32.mxu1 %v412_v16 }
  0xf8   : > { %v359_v19 = vpop.f32.mrb[7].mxu0  ;;  %1327 = vmatmul.mubr.f32.gmra.mrb[4].mxu1 %v413_v17  ;;  %v415_v12 = vmax.f32 %v1275_v18, 0.0 }
  0xf9   : > { %v414_v21 = vmax.f32 %v359_v19, 0.0  ;;  %1546 = vmatpush3.bf16.msra.mxu1 %v1656_v20 }
  0xfa   : > { %1539 = vmatprep.subr.bf16.mxu1 %v1667_v24 }
  0xfb   : > { %v1278_v22 = vpop.f32.mrb[8].mxu0  ;;  %1329 = vmatprep.mubr.f32.mxu1 %v414_v21 }
  0xfc   : > { %v369_v23 = vpop.f32.mrb[9].mxu0  ;;  %1330 = vmatmul.mubr.f32.gmra.mrb[6].mxu1 %v415_v12  ;;  %v417_v14 = vmax.f32 %v1278_v22, 0.0 }
  0xfd   : > { %v416_v25 = vmax.f32 %v369_v23, 0.0  ;;  %1547 = vmatpush3.bf16.msra.mxu1 %v1667_v24 }
  0xfe   : > { %1540 = vmatprep.subr.bf16.mxu1 %v1679_v29 }
  0xff   : > { %v1281_v26 = vpop.f32.mrb[10].mxu0  ;;  %1332 = vmatprep.mubr.f32.mxu1 %v416_v25 }
 0x100   : > { %v379_v27 = vpop.f32.mrb[11].mxu0  ;;  %1333 = vmatmul.mubr.f32.gmra.mrb[8].mxu1 %v417_v14  ;;  %v419_v20 = vmax.f32 %v1281_v26, 0.0 }
 0x101   : > { %v418_v28 = vmax.f32 %v379_v27, 0.0  ;;  %1548 = vmatpush3.bf16.msra.mxu1 %v1679_v29 }
 0x102   : > { %1541 = vmatprep.subr.bf16.mxu1 %v1693_v34 }
 0x103   : > { %v1284_v30 = vpop.f32.mrb[12].mxu0  ;;  %1335 = vmatprep.mubr.f32.mxu1 %v418_v28 }
 0x104   : > { %v389_v31 = vpop.f32.mrb[13].mxu0  ;;  %1336 = vmatmul.mubr.f32.gmra.mrb[10].mxu1 %v419_v20  ;;  %v421_v24 = vmax.f32 %v1284_v30, 0.0 }
 0x105   : > { %v420_v32 = vmax.f32 %v389_v31, 0.0  ;;  %1549 = vmatpush3.bf16.msra.mxu1 %v1693_v34 }
 0x106   : > { %1542 = vmatprep.subr.bf16.mxu1 %v1707_v39 }
 0x107   : > { %v1287_v33 = vpop.f32.mrb[14].mxu0  ;;  %1338 = vmatprep.mubr.f32.mxu1 %v420_v32 }
 0x108   : > { %v399_v35 = vpop.f32.mrb[15].mxu0  ;;  %1339 = vmatmul.mubr.f32.gmra.mrb[12].mxu1 %v421_v24  ;;  %v423_v29 = vmax.f32 %v1287_v33, 0.0 }
 0x109   : > { %v422_v36 = vmax.f32 %v399_v35, 0.0  ;;  %1550 = vmatpush3.bf16.msra.mxu1 %v1707_v39 }
 0x10a   : > { %1543 = vmatprep.subr.bf16.mxu1 %v1784_v3 }
 0x10b   : > { %1341 = vmatprep.mubr.f32.mxu1 %v422_v36  ;;  %v1362_v37 = vpop.f32.mrb[16].mxu0 }
 0x10c   : > { %1342 = vmatmul.mubr.f32.gmra.mrb[14].mxu1 %v423_v29  ;;  %v732_v38 = vpop.f32.mrb[17].mxu0  ;;  %v812_v34 = vmax.f32 %v1362_v37, 0.0 }
 0x10d   : > { %v811_v40 = vmax.f32 %v732_v38, 0.0  ;;  %1551 = vmatpush3.bf16.msra.mxu1 %v1784_v3 }
 0x10f   : > { %v1365_v41 = vpop.f32.mrb[18].mxu0  ;;  %1416 = vmatprep.mubr.f32.mxu0 %v811_v40 }
 0x110   : > { %v742_v42 = vpop.f32.mrb[19].mxu0  ;;  %1417 = vmatmul.mubr.f32.vlgmr.msra.gmra.mrb[32].mxu0 %v812_v34  ;;  %v814_v44 = vmax.f32 %v1365_v41, 0.0 }
 0x111   : > { %v813_v43 = vmax.f32 %v742_v42, 0.0 }
 0x113   : > { %v1368_v45 = vpop.f32.mrb[20].mxu0  ;;  %1419 = vmatprep.mubr.f32.mxu0 %v813_v43 }
 0x114   : > { %v752_v39 = vpop.f32.mrb[21].mxu0  ;;  %1420 = vmatmul.mubr.f32.gmra.mrb[34].mxu0 %v814_v44  ;;  %v816_v47 = vmax.f32 %v1368_v45, 0.0 }
 0x115   : > { %v815_v46 = vmax.f32 %v752_v39, 0.0 }
 0x117   : > { %v1371_v48 = vpop.f32.mrb[22].mxu0  ;;  %1422 = vmatprep.mubr.f32.mxu1 %v815_v46 }
 0x118   : > { %v762_v49 = vpop.f32.mrb[23].mxu0  ;;  %1423 = vmatmul.mubr.f32.vlgmr.msra.gmra.mrb[16].mxu1 %v816_v47  ;;  %v818_v51 = vmax.f32 %v1371_v48, 0.0 }
 0x119   : > { %v817_v50 = vmax.f32 %v762_v49, 0.0 }
 0x11b   : > { %v1374_v52 = vpop.f32.mrb[24].mxu0  ;;  %1425 = vmatprep.mubr.f32.mxu1 %v817_v50 }
 0x11c   : > { %v772_v53 = vpop.f32.mrb[25].mxu0  ;;  %1426 = vmatmul.mubr.f32.gmra.mrb[18].mxu1 %v818_v51  ;;  %v820_v55 = vmax.f32 %v1374_v52, 0.0 }
 0x11d   : > { %v819_v54 = vmax.f32 %v772_v53, 0.0 }
 0x11f   : > { %v1377_v56 = vpop.f32.mrb[26].mxu0  ;;  %1428 = vmatprep.mubr.f32.mxu1 %v819_v54 }
 0x120   : > { %v782_v57 = vpop.f32.mrb[27].mxu0  ;;  %1429 = vmatmul.mubr.f32.gmra.mrb[20].mxu1 %v820_v55  ;;  %v822_v59 = vmax.f32 %v1377_v56, 0.0 }
 0x121   : > { %v821_v58 = vmax.f32 %v782_v57, 0.0 }
 0x123   : > { %v1380_v60 = vpop.f32.mrb[28].mxu0  ;;  %1431 = vmatprep.mubr.f32.mxu1 %v821_v58 }
 0x124   : > { %v792_v61 = vpop.f32.mrb[29].mxu0  ;;  %1432 = vmatmul.mubr.f32.gmra.mrb[22].mxu1 %v822_v59  ;;  %v824_v63 = vmax.f32 %v1380_v60, 0.0 }
 0x125   : > { %v823_v62 = vmax.f32 %v792_v61, 0.0 }
 0x127   : > { %v1383_v0 = vpop.f32.mrb[30].mxu0  ;;  %1434 = vmatprep.mubr.f32.mxu1 %v823_v62 }
 0x128   : > { %v802_v1 = vpop.f32.mrb[31].mxu0  ;;  %1435 = vmatmul.mubr.f32.gmra.mrb[24].mxu1 %v824_v63  ;;  %v826_v3 = vmax.f32 %v1383_v0, 0.0 }
 0x129   : > { %v825_v2 = vmax.f32 %v802_v1, 0.0 }
 0x12b   : > { %1437 = vmatprep.mubr.f32.mxu1 %v825_v2 }
 0x12c   : > { %1438 = vmatmul.mubr.f32.gmra.mrb[26].mxu1 %v826_v3 }
 0x1c3   : > { %v1322_v4 = vpop.f32.mrb[0].mxu1 }
 0x1c4   : > { %v570_v5 = vmax.f32 %v1322_v4, 0.0  ;;  %v490_v6 = vpop.f32.mrb[1].mxu1 }
 0x1c5   : > { %v569_v7 = vmax.f32 %v490_v6, 0.0 }
 0x1c6   : > { %586 = vst.msk [vmem:[%s1811_s19 + $0x8] sm:$0xff] %vm214_vm0, %v570_v5 }
 0x1c7   : > { %585 = vst.msk [vmem:[%s1811_s19] sm:$0xff] %vm214_vm0, %v569_v7  ;;  %v1325_v8 = vpop.f32.mrb[2].mxu1 }
 0x1c8   : > { %v572_v9 = vmax.f32 %v1325_v8, 0.0  ;;  %v500_v10 = vpop.f32.mrb[3].mxu1 }
 0x1c9   : > { %v571_v11 = vmax.f32 %v500_v10, 0.0 }
 0x1ca   : > { %588 = vst.msk [vmem:[%s1811_s19 + $0x18] sm:$0xff] %vm214_vm0, %v572_v9 }
 0x1cb   : > { %587 = vst.msk [vmem:[%s1811_s19 + $0x10] sm:$0xff] %vm214_vm0, %v571_v11  ;;  %v1328_v13 = vpop.f32.mrb[4].mxu1 }
 0x1cc   : > { %v574_v15 = vmax.f32 %v1328_v13, 0.0  ;;  %v510_v16 = vpop.f32.mrb[5].mxu1 }
 0x1cd   : > { %v573_v17 = vmax.f32 %v510_v16, 0.0 }
 0x1ce   : > { %590 = vst.msk [vmem:[%s1811_s19 + $0x28] sm:$0xff] %vm214_vm0, %v574_v15 }
 0x1cf   : > { %589 = vst.msk [vmem:[%s1811_s19 + $0x20] sm:$0xff] %vm214_vm0, %v573_v17  ;;  %v1331_v18 = vpop.f32.mrb[6].mxu1 }
 0x1d0   : > { %v576_v19 = vmax.f32 %v1331_v18, 0.0  ;;  %v520_v21 = vpop.f32.mrb[7].mxu1 }
 0x1d1   : > { %v575_v12 = vmax.f32 %v520_v21, 0.0 }
 0x1d2   : > { %592 = vst.msk [vmem:[%s1811_s19 + $0x38] sm:$0xff] %vm214_vm0, %v576_v19 }
 0x1d3   : > { %591 = vst.msk [vmem:[%s1811_s19 + $0x30] sm:$0xff] %vm214_vm0, %v575_v12  ;;  %v1334_v22 = vpop.f32.mrb[8].mxu1 }
 0x1d4   : > { %v578_v23 = vmax.f32 %v1334_v22, 0.0  ;;  %v530_v25 = vpop.f32.mrb[9].mxu1 }
 0x1d5   : > { %v577_v14 = vmax.f32 %v530_v25, 0.0 }
 0x1d6   : > { %594 = vst.msk [vmem:[%s1811_s19 + $0x48] sm:$0xff] %vm214_vm0, %v578_v23 }
 0x1d7   : > { %593 = vst.msk [vmem:[%s1811_s19 + $0x40] sm:$0xff] %vm214_vm0, %v577_v14  ;;  %v1337_v26 = vpop.f32.mrb[10].mxu1 }
 0x1d8   : > { %v580_v27 = vmax.f32 %v1337_v26, 0.0  ;;  %v540_v28 = vpop.f32.mrb[11].mxu1 }
 0x1d9   : > { %v579_v20 = vmax.f32 %v540_v28, 0.0 }
 0x1da   : > { %596 = vst.msk [vmem:[%s1811_s19 + $0x58] sm:$0xff] %vm214_vm0, %v580_v27 }
 0x1db   : > { %595 = vst.msk [vmem:[%s1811_s19 + $0x50] sm:$0xff] %vm214_vm0, %v579_v20  ;;  %v1340_v30 = vpop.f32.mrb[12].mxu1 }
 0x1dc   : > { %v582_v31 = vmax.f32 %v1340_v30, 0.0  ;;  %v550_v32 = vpop.f32.mrb[13].mxu1 }
 0x1dd   : > { %v581_v24 = vmax.f32 %v550_v32, 0.0 }
 0x1de   : > { %598 = vst.msk [vmem:[%s1811_s19 + $0x68] sm:$0xff] %vm214_vm0, %v582_v31 }
 0x1df   : > { %597 = vst.msk [vmem:[%s1811_s19 + $0x60] sm:$0xff] %vm214_vm0, %v581_v24  ;;  %v1343_v33 = vpop.f32.mrb[14].mxu1 }
 0x1e0   : > { %v584_v35 = vmax.f32 %v1343_v33, 0.0  ;;  %v560_v36 = vpop.f32.mrb[15].mxu1 }
 0x1e1   : > { %v583_v29 = vmax.f32 %v560_v36, 0.0 }
 0x1e2   : > { %600 = vst.msk [vmem:[%s1811_s19 + $0x78] sm:$0xff] %vm214_vm0, %v584_v35 }
 0x1e3   : > { %599 = vst.msk [vmem:[%s1811_s19 + $0x70] sm:$0xff] %vm214_vm0, %v583_v29  ;;  %v1418_v37 = vpop.f32.mrb[32].mxu0 }
 0x1e4   : > { %v973_v38 = vmax.f32 %v1418_v37, 0.0  ;;  %v893_v40 = vpop.f32.mrb[33].mxu0 }
 0x1e5   : > { %v972_v34 = vmax.f32 %v893_v40, 0.0 }
 0x1e6   : > { %1119 = vst.msk [vmem:[%s1811_s19 + $0x88] sm:$0xff] %vm214_vm0, %v973_v38 }
 0x1e7   : > { %1118 = vst.msk [vmem:[%s1811_s19 + $0x80] sm:$0xff] %vm214_vm0, %v972_v34  ;;  %v1421_v41 = vpop.f32.mrb[34].mxu0 }
 0x1e8   : > { %v975_v42 = vmax.f32 %v1421_v41, 0.0  ;;  %v903_v43 = vpop.f32.mrb[35].mxu0 }
 0x1e9   : > { %v974_v44 = vmax.f32 %v903_v43, 0.0 }
 0x1ea   : > { %1121 = vst.msk [vmem:[%s1811_s19 + $0x98] sm:$0xff] %vm214_vm0, %v975_v42 }
 0x1eb   : > { %1120 = vst.msk [vmem:[%s1811_s19 + $0x90] sm:$0xff] %vm214_vm0, %v974_v44  ;;  %v1424_v45 = vpop.f32.mrb[16].mxu1 }
 0x1ec   : > { %v977_v39 = vmax.f32 %v1424_v45, 0.0  ;;  %v913_v46 = vpop.f32.mrb[17].mxu1 }
 0x1ed   : > { %v976_v47 = vmax.f32 %v913_v46, 0.0 }
 0x1ee   : > { %1123 = vst.msk [vmem:[%s1811_s19 + $0xa8] sm:$0xff] %vm214_vm0, %v977_v39 }
 0x1ef   : > { %1122 = vst.msk [vmem:[%s1811_s19 + $0xa0] sm:$0xff] %vm214_vm0, %v976_v47  ;;  %v1427_v48 = vpop.f32.mrb[18].mxu1 }
 0x1f0   : > { %v979_v49 = vmax.f32 %v1427_v48, 0.0  ;;  %v923_v50 = vpop.f32.mrb[19].mxu1 }
 0x1f1   : > { %v978_v51 = vmax.f32 %v923_v50, 0.0 }
 0x1f2   : > { %1125 = vst.msk [vmem:[%s1811_s19 + $0xb8] sm:$0xff] %vm214_vm0, %v979_v49 }
 0x1f3   : > { %1124 = vst.msk [vmem:[%s1811_s19 + $0xb0] sm:$0xff] %vm214_vm0, %v978_v51  ;;  %v1430_v52 = vpop.f32.mrb[20].mxu1 }
 0x1f4   : > { %v981_v53 = vmax.f32 %v1430_v52, 0.0  ;;  %v933_v54 = vpop.f32.mrb[21].mxu1 }
 0x1f5   : > { %v980_v55 = vmax.f32 %v933_v54, 0.0 }
 0x1f6   : > { %1127 = vst.msk [vmem:[%s1811_s19 + $0xc8] sm:$0xff] %vm214_vm0, %v981_v53 }
 0x1f7   : > { %1126 = vst.msk [vmem:[%s1811_s19 + $0xc0] sm:$0xff] %vm214_vm0, %v980_v55  ;;  %v1433_v56 = vpop.f32.mrb[22].mxu1 }
 0x1f8   : > { %v983_v57 = vmax.f32 %v1433_v56, 0.0  ;;  %v943_v58 = vpop.f32.mrb[23].mxu1 }
 0x1f9   : > { %v982_v59 = vmax.f32 %v943_v58, 0.0 }
 0x1fa   : > { %1129 = vst.msk [vmem:[%s1811_s19 + $0xd8] sm:$0xff] %vm214_vm0, %v983_v57 }
 0x1fb   : > { %1128 = vst.msk [vmem:[%s1811_s19 + $0xd0] sm:$0xff] %vm214_vm0, %v982_v59  ;;  %v1436_v60 = vpop.f32.mrb[24].mxu1 }
 0x1fc   : > { %v985_v61 = vmax.f32 %v1436_v60, 0.0  ;;  %v953_v62 = vpop.f32.mrb[25].mxu1 }
 0x1fd   : > { %v984_v63 = vmax.f32 %v953_v62, 0.0 }
 0x1fe   : > { %1131 = vst.msk [vmem:[%s1811_s19 + $0xe8] sm:$0xff] %vm214_vm0, %v985_v61 }
 0x1ff   : > { %1130 = vst.msk [vmem:[%s1811_s19 + $0xe0] sm:$0xff] %vm214_vm0, %v984_v63  ;;  %v1439_v0 = vpop.f32.mrb[26].mxu1 }
 0x200   : > { %v987_v1 = vmax.f32 %v1439_v0, 0.0  ;;  %v963_v2 = vpop.f32.mrb[27].mxu1 }
 0x201   : > { %v986_v3 = vmax.f32 %v963_v2, 0.0 }
 0x202   : > { %1133 = vst.msk [vmem:[%s1811_s19 + $0xf8] sm:$0xff] %vm214_vm0, %v987_v1 }
 0x203   : > { %1132 = vst.msk [vmem:[%s1811_s19 + $0xf0] sm:$0xff] %vm214_vm0, %v986_v3 }
 0x204 PF: > { %s13_s12 = sadd.s32 1, %s1566_s12  }
 0x205   : > { %p10_p4 = scmp.ge.s32.totalorder %s13_s12, 4  }
 0x207   :  { %12 = sbr.rel (!%p10_p4) target bundleno = 1 (0x1), region = 64 }

</bundles_post_ra>
